<compile_context>
chip_gen: v7x
topology: tpu7x:2x2x1
jax: 0.10.0
libtpu: 0.0.40
codegen_flags: <defaults>
</compile_context>

<pallas_src>
import functools
import math

import jax
import jax.numpy as jnp
from jax.experimental import pallas as pl
from jax.experimental.pallas import tpu as pltpu


def _round_up(v, m):
    return ((v + m - 1) // m) * m


def _vmem_footprint(N, Dp, Dqp, Dvp):
    """(weights_bytes, per_batch_element_bytes) of in-kernel VMEM usage."""
    wtot = 2 * Dqp + Dvp
    weights = Dp * wtot * 2 + wtot * 4            # bf16 W_qkv + f32 bias (single-buffered)
    per_elem = (
        2 * N * Dp * 4                            # x block (f32), double-buffered
        + 2 * N * Dvp * 4                         # out block (f32), double-buffered (Dv <= Dvp)
        + N * Dp * 2                              # bf16 copy of the x rows
        + N * wtot * 6                            # fused qkv f32 + bf16 q/k/v copies
        + N * N * 10                              # scores f32 + exp f32 + attn_w bf16
    )
    return weights, per_elem


def _pick_batch_block(B, N, Dp, Dqp, Dvp, *, vmem_budget, target_rows=1024):
    """Largest divisor of B that fits the VMEM budget, keeps the fused MXU row
    count (Bb*N) <= target_rows, and leaves >= 2 grid steps (v7x megacore)."""
    weights, per_elem = _vmem_footprint(N, Dp, Dqp, Dvp)
    best = 1
    for bb in range(1, B + 1):
        if B % bb:
            continue
        if B >= 2 and B // bb < 2:
            # Keep at least 2 grid steps so the "parallel" axis can shard
            # across the two TensorCores on v7x (single-TC v5e/v6e unaffected).
            continue
        if bb * N > target_rows:
            continue
        if weights + bb * per_elem > vmem_budget:
            continue
        best = bb
    return best


def _self_attention_kernel(x_ref, wqkv_ref, bqkv_ref, o_ref, *, dqp, dvp):
    """One grid step handles a block of Bb batch elements.

    x_ref    : (Bb, N, Dp)           f32 input tokens (Dp = 128-padded input_dim)
    wqkv_ref : (Dp, 2*Dqp + Dvp)     bf16 fused [W_q*scale | W_k | W_v]
    bqkv_ref : (1, 2*Dqp + Dvp)      f32  fused [b_q*scale | b_k | b_v]
    o_ref    : (Bb, N, Dv)           f32 attention output (unpadded)
    """
    Bb, N, Dp = x_ref.shape
    Dv = o_ref.shape[-1]

    # Fuse batch & token rows for the projection: M = Bb*N rows on the MXU.
    x2 = x_ref[...].reshape(Bb * N, Dp).astype(jnp.bfloat16)

    # Single fused projection (1/sqrt(query_dim) already folded into the query
    # weight/bias columns in the wrapper).
    qkv = jnp.dot(x2, wqkv_ref[...], preferred_element_type=jnp.float32) + bqkv_ref[...]

    # Slice q/k/v back out at 128-aligned lane offsets.
    q = qkv[:, :dqp].reshape(Bb, N, dqp).astype(jnp.bfloat16)
    k = qkv[:, dqp:2 * dqp].reshape(Bb, N, dqp).astype(jnp.bfloat16)
    v = qkv[:, 2 * dqp:].reshape(Bb, N, dvp).astype(jnp.bfloat16)

    # scores[b, i, j] = sum_d q[b, i, d] * k[b, j, d]   (transposed-RHS, no k.T)
    scores = jax.lax.dot_general(
        q, k,
        dimension_numbers=(((2,), (2,)), ((0,), (0,))),
        preferred_element_type=jnp.float32)             # (Bb, N, N) f32

    # Numerically-stable softmax over the key axis.
    m = jnp.max(scores, axis=-1, keepdims=True)
    p = jnp.exp(scores - m)
    denom = jnp.sum(p, axis=-1, keepdims=True)
    attn_w = (p * pl.reciprocal(denom, approx=True)).astype(jnp.bfloat16)

    # out[b, i, d] = sum_j attn_w[b, i, j] * v[b, j, d]
    out = jax.lax.dot_general(
        attn_w, v,
        dimension_numbers=(((2,), (1,)), ((0,), (0,))),
        preferred_element_type=jnp.float32)              # (Bb, N, Dvp) f32

    # Store only the real value columns (padded columns are exact zeros).
    o_ref[...] = out[..., :Dv].astype(o_ref.dtype)


def self_attention(x, wq, bq, wk, bk, wv, bv, *, batch_block=None,
                   vmem_budget_bytes=40 << 20):
    """x: (B, N, D) f32; w*: (D, Dout); b*: (Dout,). Returns (B, N, Dv) f32."""
    B, N, D = x.shape
    Dq = wq.shape[1]
    Dv = wv.shape[1]
    assert wk.shape[1] == Dq, "query_dim must equal key_dim"

    # Lane-dense padding: pad feature dims to multiples of 128 with zeros.
    # Zero rows/columns contribute nothing, so this is numerically exact.
    # (The fused projection's output width 2*Dqp+Dvp >= 384 already fills the
    #  256-wide MXU on v6e/v7x; padding the contraction further to 256 would
    #  only inflate the dominant x DMA stream, so we keep 128 there.)
    Dp, Dqp, Dvp = _round_up(D, 128), _round_up(Dq, 128), _round_up(Dv, 128)
    Wtot = 2 * Dqp + Dvp

    # Fold the 1/sqrt(query_dim) scale into the (constant) query weights/bias.
    scale = 1.0 / math.sqrt(float(Dq))

    xp = jnp.pad(x, ((0, 0), (0, 0), (0, Dp - D)))
    wqkv = jnp.concatenate([
        jnp.pad(wq * scale, ((0, Dp - D), (0, Dqp - Dq))),
        jnp.pad(wk,         ((0, Dp - D), (0, Dqp - Dq))),
        jnp.pad(wv,         ((0, Dp - D), (0, Dvp - Dv))),
    ], axis=1).astype(jnp.bfloat16)                                  # (Dp, Wtot)
    bqkv = jnp.concatenate([
        jnp.pad(bq * scale, (0, Dqp - Dq)),
        jnp.pad(bk,         (0, Dqp - Dq)),
        jnp.pad(bv,         (0, Dvp - Dv)),
    ]).reshape(1, Wtot).astype(jnp.float32)                          # (1, Wtot)

    if batch_block is None:
        Bb = _pick_batch_block(B, N, Dp, Dqp, Dvp, vmem_budget=vmem_budget_bytes)
    else:
        Bb = batch_block
    assert B % Bb == 0, "batch_block must divide batch size"

    # Explicit scoped-VMEM limit (v5e defaults to only 16 MiB); conservatively
    # count the weights twice, cap at v7x's 64 MiB physical VMEM.
    weights_b, per_elem_b = _vmem_footprint(N, Dp, Dqp, Dvp)
    est = 2 * weights_b + Bb * per_elem_b
    vmem_limit = int(min(64 << 20, max(32 << 20, 2 * est)))

    # Grid-invariant weights/biases: single-buffered (never re-fetched).
    weight_spec = pl.BlockSpec((Dp, Wtot), lambda b: (0, 0),
                               pipeline_mode=pl.Buffered(1))
    bias_spec = pl.BlockSpec((1, Wtot), lambda b: (0, 0),
                             pipeline_mode=pl.Buffered(1))

    kernel = functools.partial(_self_attention_kernel, dqp=Dqp, dvp=Dvp)

    out = pl.pallas_call(
        kernel,
        out_shape=jax.ShapeDtypeStruct((B, N, Dv), x.dtype),
        grid_spec=pltpu.PrefetchScalarGridSpec(
            num_scalar_prefetch=0,
            grid=(B // Bb,),
            in_specs=[
                pl.BlockSpec((Bb, N, Dp), lambda b: (b, 0, 0)),   # x block
                weight_spec,                                      # fused W_qkv
                bias_spec,                                        # fused b_qkv
            ],
            out_specs=pl.BlockSpec((Bb, N, Dv), lambda b: (b, 0, 0)),
        ),
        compiler_params=pltpu.CompilerParams(
            dimension_semantics=("parallel",),
            vmem_limit_bytes=vmem_limit),
    )(xp, wqkv, bqkv)

    return out


def _reference(x, wq, bq, wk, bk, wv, bv, query_dim):
    # Pure-JAX f32 reference mirroring the PyTorch forward pass.
    Q = x @ wq + bq
    K = x @ wk + bk
    V = x @ wv + bv
    scores = jnp.einsum("bnd,bmd->bnm", Q, K) / jnp.sqrt(jnp.float32(query_dim))
    w = jax.nn.softmax(scores, axis=2)
    return jnp.einsum("bnm,bmd->bnd", w, V)


if __name__ == "__main__":
    # Small shapes consistent with the module's forward.
    B, N = 2, 8
    input_dim, query_dim, key_dim, value_dim = 32, 16, 16, 16
    assert query_dim == key_dim

    key = jax.random.PRNGKey(0)
    kx, kwq, kbq, kwk, kbk, kwv, kbv = jax.random.split(key, 7)

    x = jax.random.normal(kx, (B, N, input_dim), dtype=jnp.float32)

    # Deterministic parameter init (uniform, like nn.Linear's default scale).
    bound = 1.0 / jnp.sqrt(jnp.float32(input_dim))
    wq = jax.random.uniform(kwq, (input_dim, query_dim), jnp.float32, -bound, bound)
    bq = jax.random.uniform(kbq, (query_dim,), jnp.float32, -bound, bound)
    wk = jax.random.uniform(kwk, (input_dim, key_dim), jnp.float32, -bound, bound)
    bk = jax.random.uniform(kbk, (key_dim,), jnp.float32, -bound, bound)
    wv = jax.random.uniform(kwv, (input_dim, value_dim), jnp.float32, -bound, bound)
    bv = jax.random.uniform(kbv, (value_dim,), jnp.float32, -bound, bound)

    out = self_attention(x, wq, bq, wk, bk, wv, bv)
    out = jax.block_until_ready(out)

    ref = _reference(x, wq, bq, wk, bk, wv, bv, query_dim)
    assert out.shape == (B, N, value_dim)
    # Tolerance loosened vs. the f32 reference because the kernel runs its
    # matmuls with bf16 operands (f32 accumulation).
    assert jnp.allclose(out, ref, atol=5e-2, rtol=5e-2), "mismatch vs reference"

    print("KERNEL_OK")
</pallas_src>

<mosaic_0001>
module attributes {stable_mosaic.version = 11 : i64} {
  func.func @_self_attention_kernel(%arg0: i32, %arg1: memref<1x8x128xf32, #tpu.memory_space<vmem>>, %arg2: memref<128x384xbf16, #tpu.memory_space<vmem>>, %arg3: memref<1x384xf32, #tpu.memory_space<vmem>>, %arg4: memref<1x8x16xf32, #tpu.memory_space<vmem>>) attributes {dimension_semantics = [#tpu.dimension_semantics<parallel>], iteration_bounds = array<i64: 2>, scalar_prefetch = 0 : i64, scratch_operands = 0 : i64, tpu.core_type = #tpu.core_type<tc>, window_params = [{transform_indices = @transform_0, window_bounds = array<i64: 1, 8, 128>}, {pipeline_mode = #tpu.pipeline_mode<synchronous>, transform_indices = @transform_1, window_bounds = array<i64: 128, 384>}, {pipeline_mode = #tpu.pipeline_mode<synchronous>, transform_indices = @transform_2, window_bounds = array<i64: 1, 384>}, {transform_indices = @transform_3, window_bounds = array<i64: 1, 8, 16>}]} {
    %c0 = arith.constant 0 : index
    %c0_0 = arith.constant 0 : index
    %c0_1 = arith.constant 0 : index
    %0 = vector.load %arg1[%c0, %c0_0, %c0_1] : memref<1x8x128xf32, #tpu.memory_space<vmem>>, vector<1x8x128xf32>
    %1 = vector.shape_cast %0 : vector<1x8x128xf32> to vector<8x128xf32>
    %2 = arith.truncf %1 : vector<8x128xf32> to vector<8x128xbf16>
    %c0_2 = arith.constant 0 : index
    %c0_3 = arith.constant 0 : index
    %3 = vector.load %arg2[%c0_2, %c0_3] : memref<128x384xbf16, #tpu.memory_space<vmem>>, vector<128x384xbf16>
    %cst = arith.constant dense<0.000000e+00> : vector<8x384xf32>
    %4 = tpu.matmul %2, %3, %cst {dimension_numbers = #tpu.dot_dimension_numbers<[1], [0], [0], [1], [0, 0, 1, 1], [], []>} : vector<8x128xbf16>, vector<128x384xbf16>, vector<8x384xf32> -> vector<8x384xf32>
    %c0_4 = arith.constant 0 : index
    %c0_5 = arith.constant 0 : index
    %5 = vector.load %arg3[%c0_4, %c0_5] : memref<1x384xf32, #tpu.memory_space<vmem>>, vector<1x384xf32>
    %6 = vector.broadcast %5 : vector<1x384xf32> to vector<8x384xf32>
    %7 = arith.addf %4, %6 : vector<8x384xf32>
    %8 = vector.extract_strided_slice %7 {offsets = [0, 0], sizes = [8, 128], strides = [1, 1]} : vector<8x384xf32> to vector<8x128xf32>
    %9 = vector.shape_cast %8 : vector<8x128xf32> to vector<1x8x128xf32>
    %10 = arith.truncf %9 : vector<1x8x128xf32> to vector<1x8x128xbf16>
    %11 = vector.extract_strided_slice %7 {offsets = [0, 128], sizes = [8, 128], strides = [1, 1]} : vector<8x384xf32> to vector<8x128xf32>
    %12 = vector.shape_cast %11 : vector<8x128xf32> to vector<1x8x128xf32>
    %13 = arith.truncf %12 : vector<1x8x128xf32> to vector<1x8x128xbf16>
    %14 = vector.extract_strided_slice %7 {offsets = [0, 256], sizes = [8, 128], strides = [1, 1]} : vector<8x384xf32> to vector<8x128xf32>
    %15 = vector.shape_cast %14 : vector<8x128xf32> to vector<1x8x128xf32>
    %16 = arith.truncf %15 : vector<1x8x128xf32> to vector<1x8x128xbf16>
    %cst_6 = arith.constant dense<0.000000e+00> : vector<1x8x8xf32>
    %17 = tpu.matmul %10, %13, %cst_6 {dimension_numbers = #tpu.dot_dimension_numbers<[2], [2], [1], [1], [0, 0, 0, 1, 1, 1], [0], [0]>} : vector<1x8x128xbf16>, vector<1x8x128xbf16>, vector<1x8x8xf32> -> vector<1x8x8xf32>
    %cst_7 = arith.constant dense<0xFF800000> : vector<1x8xf32>
    %18 = vector.multi_reduction <maximumf>, %17, %cst_7 [2] : vector<1x8x8xf32> to vector<1x8xf32>
    %19 = vector.shape_cast %18 : vector<1x8xf32> to vector<1x8x1xf32>
    %20 = vector.broadcast %19 : vector<1x8x1xf32> to vector<1x8x8xf32>
    %21 = arith.subf %17, %20 : vector<1x8x8xf32>
    %22 = math.exp %21 : vector<1x8x8xf32>
    %cst_8 = arith.constant dense<0.000000e+00> : vector<1x8xf32>
    %23 = vector.multi_reduction <add>, %22, %cst_8 [2] : vector<1x8x8xf32> to vector<1x8xf32>
    %24 = vector.shape_cast %23 : vector<1x8xf32> to vector<1x8x1xf32>
    %25 = tpu.reciprocal %24 {approx = true} : vector<1x8x1xf32> -> vector<1x8x1xf32>
    %26 = vector.broadcast %25 : vector<1x8x1xf32> to vector<1x8x8xf32>
    %27 = arith.mulf %22, %26 : vector<1x8x8xf32>
    %28 = arith.truncf %27 : vector<1x8x8xf32> to vector<1x8x8xbf16>
    %cst_9 = arith.constant dense<0.000000e+00> : vector<1x8x128xf32>
    %29 = tpu.matmul %28, %16, %cst_9 {dimension_numbers = #tpu.dot_dimension_numbers<[2], [1], [1], [2], [0, 0, 0, 1, 1, 2], [0], [0]>} : vector<1x8x8xbf16>, vector<1x8x128xbf16>, vector<1x8x128xf32> -> vector<1x8x128xf32>
    %30 = vector.extract_strided_slice %29 {offsets = [0, 0, 0], sizes = [1, 8, 16], strides = [1, 1, 1]} : vector<1x8x128xf32> to vector<1x8x16xf32>
    %c0_10 = arith.constant 0 : index
    %c0_11 = arith.constant 0 : index
    %c0_12 = arith.constant 0 : index
    %31 = vector.load %arg4[%c0_10, %c0_11, %c0_12] : memref<1x8x16xf32, #tpu.memory_space<vmem>>, vector<1x8x16xf32>
    tpu.vector_store %arg4[%c0_10, %c0_11, %c0_12], %30 {strides = array<i32>} : memref<1x8x16xf32, #tpu.memory_space<vmem>>, vector<1x8x16xf32>,
    return
  }
  func.func @transform_0(%arg0: i32) -> (i32, i32, i32) {
    %c0_i32 = arith.constant 0 : i32
    %c0_i32_0 = arith.constant 0 : i32
    %c0_i32_1 = arith.constant 0 : i32
    return %arg0, %c0_i32, %c0_i32_0 : i32, i32, i32
  }
  func.func @transform_1(%arg0: i32) -> (i32, i32) {
    %c0_i32 = arith.constant 0 : i32
    %c0_i32_0 = arith.constant 0 : i32
    %c0_i32_1 = arith.constant 0 : i32
    return %c0_i32, %c0_i32_0 : i32, i32
  }
  func.func @transform_2(%arg0: i32) -> (i32, i32) {
    %c0_i32 = arith.constant 0 : i32
    %c0_i32_0 = arith.constant 0 : i32
    %c0_i32_1 = arith.constant 0 : i32
    return %c0_i32, %c0_i32_0 : i32, i32
  }
  func.func @transform_3(%arg0: i32) -> (i32, i32, i32) {
    %c0_i32 = arith.constant 0 : i32
    %c0_i32_0 = arith.constant 0 : i32
    %c0_i32_1 = arith.constant 0 : i32
    return %arg0, %c0_i32, %c0_i32_0 : i32, i32, i32
  }
}

</mosaic_0001>

<bundles_post_ra>
// kernel: tpu_custom_call.1
= control target key start
LH: loop header
LB: loop body
LE: loop exit
PB: predicated region body
PF: predicated region fallthrough
CT: control target
= control target key end

     0   :  { %8 = vsyncpa [#allocation3], 0  ;;  %s1213_s0 = inlined_call_operand.hbm [shape: f32[2,8,128], index: 0, kind: input, shape index: {}]   ;;  %s1214_s1 = inlined_call_operand.hbm [shape: bf16[128,384], index: 1, kind: input, shape index: {}]   ;;  %s1215_s2 = inlined_call_operand.vmem [shape: f32[1,384], index: 2, kind: input, shape index: {}]   ;;  %s1216_s3 = inlined_call_operand.hbm [shape: f32[2,8,16], index: 3, kind: output, shape index: {}]  }
   0x1   :  { %10 = vsyncpa [#allocation3 + $0x1], 0 }
   0x2   :  { %11 = vsyncpa [#allocation6], 0 }
   0x3   :  { %12 = vsyncpa [#allocation4], 0 }
   0x4   :  { %14 = vsyncpa [#allocation4 + $0x1], 0  ;;  %s1001_s12 = smov 0   ;;  %s1003_s13 = smov 0  }
   0x5   :  { %s1005_s14 = smov 0   ;;  %s1007_s15 = smov 0  }
   0x6 LB: > { %s1022_s16 = sadd.s32 4294967295, %s971_s15   ;;  %s661_s17 = sadd.s32 4294967294, %s971_s15   ;;  %s971_s15 = sphi %s1007_s15, %s1236_s15   ;;  %s967_s14 = sphi %s1005_s14, %s1235_s14   ;;  %s963_s13 = sphi %s1003_s13, %s1234_s13   ;;  %s959_s12 = sphi %s1001_s12, %s1233_s12  }
   0x7   : > { %p40_p0 = scmp.ne.s32.totalorder %s963_s13, %s959_s12  ;;  %p1217_p1 = scmp.eq.s32.totalorder %s1022_s16, 0 }
   0x8   : > { %p112_p3 = scmp.eq.s32.totalorder %s661_s17, 1  ;;  %p662_p5 = scmp.ge.s32.totalorder %s971_s15, 1 }
   0x9   : > { %p1031_p4 = por %p1217_p1, %p40_p0  ;;  %p119_p7 = scmp.lt.s32.totalorder %s971_s15, 3 }
   0xa   : > { %p1036_p6 = por %p112_p3, %p40_p0  ;;  %s973_s21 = smov [#allocation5]  }
   0xb   : > { %s1220_s18 = scalar_select %p1031_p4, 1, 0 }
   0xc   : > { %s1221_s19 = scalar_select %p1036_p6, 1, 0 }
   0xd   : > { %p1041_p8 = pnand %p662_p5, %p119_p7  ;;  %s131_s22 = sshll.u32 %s973_s21, 4  ;;  %s1045_s22 = int_to_ptr.vmem [resolvable:$true] %s131_s22 }
   0xe   : > { %s1057_s24 = sadd.s32 1, %s971_s15   ;;  %s27_s25 = sadd.s32 1, %s967_s14 }
   0xf   : > { %s1222_s20 = scalar_select %p1041_p8, 1, 0 }
  0x10   : > { %p753_p9 = pneg %p1041_p8  ;;  %s24_s26 = ssub.s32 %s971_s15, %s1057_s24 }
  0x11   : > { %s843_s29 = scalar_lea.hbm %s1214_s1, 3072 }
  0x12   : > { %p1052_p11 = pnand %p753_p9, %p1217_p1  ;;  %p844_p12 = scmp.ne.s32.totalorder %s1214_s1, %s843_s29 }
  0x13   : > { %p850_p5 = scmp.lt.u32.totalorder %s843_s29, %s1214_s1 }
  0x14   : > { %p845_p13 = pneg %p1052_p11 }
  0x16   : > { %p846_p0 = pnand %p845_p13, %p844_p12 }
  0x18   : > { %p847_p3 = pneg %p846_p0 }
  0x1a   : > { %p852_p7 = pnand %p850_p5, %p847_p3 }
  0x1c   : > { %855 = shalt.err (!%p852_p7)
}
  0x1d   : > { %s856_s7 = scalar_lea.vmem %s1045_s22, 3072  ;;  %p864_p2 = scmp.lt.s32.totalorder %s1045_s22, %s1045_s22 }
  0x1e   : > { %p857_p9 = scmp.ne.s32.totalorder %s1045_s22, %s856_s7  ;;  %p865_p6 = scmp.lt.s32.totalorder %s856_s7, %s856_s7 }
  0x20   : > { %p859_p10 = pnand %p857_p9, %p845_p13  ;;  %p866_p4 = por %p865_p6, %p864_p2 }
  0x22   : > { %p860_p1 = pneg %p859_p10 }
  0x24   : > { %p867_p8 = pnand %p866_p4, %p860_p1 }
  0x26   : > { %870 = shalt.err (!%p867_p8)
}
  0x27   : > { %s974_s8 = smov 192   ;;  %s975_s9 = smov 12  }
  0x28   : > { %756 = dma.hbm_to_vmem [thread:$0]  (!%p1052_p11), %s1214_s1, 3072, %s1045_s22, [#allocation6], %s974_s8, %s974_s8, %s975_s9  }
  0x29   : > { %p25_p2 = scmp.eq.s32.totalorder %s24_s26, 0  ;;  %p34_p1 = scmp.ne.s32.totalorder %s967_s14, %s963_s13 }
  0x2a   : > { %p35_p4 = scmp.eq.s32.totalorder %s971_s15, 0  ;;  %p766_p6 = scmp.lt.s32.totalorder %s971_s15, 2 }
  0x2b   : > { %s1088_s17 = scalar_select %p25_p2, %s967_s14, %s27_s25  }
  0x2c   : > { %p36_p8 = por %p35_p4, %p34_p1  ;;  %p1224_p10 = scmp.eq.s32.totalorder %s1022_s16, 1 }
  0x2d   : > { %s148_s27 = sand.u32 1, %s967_s14   ;;  %s666_s28 = sshll.u32 %s971_s15, 7 }
  0x2e   : > { %p1092_p12 = por %p1224_p10, %p34_p1  ;;  %s665_s29 = sshll.u32 %s148_s27, 3 }
  0x2f   : > { %s1101_s4 = scalar_lea.hbm %s1213_s0, %s666_s28  ;;  %s152_s22 = scalar_lea.vmem [#allocation2], %s665_s29 }
  0x30   : > { %s159_s25 = sshll.u32 %s152_s22, 4  ;;  %p1103_p11 = pnand %p766_p6, %p36_p8  ;;  %s1107_s25 = int_to_ptr.vmem [resolvable:$true] %s159_s25 }
  0x31   : > { %s149_s5 = scalar_lea.sflag [#allocation3], %s148_s27  ;;  %s871_s6 = scalar_lea.hbm %s1101_s4, 128 }
  0x32   : > { %p872_p13 = scmp.ne.s32.totalorder %s1101_s4, %s871_s6  ;;  %p873_p0 = pneg %p1103_p11 }
  0x33   : > { %s876_s9 = scalar_lea.hbm %s1213_s0, 256  ;;  %p877_p7 = scmp.lt.u32.totalorder %s1101_s4, %s1213_s0 }
  0x34   : > { %p874_p3 = pnand %p873_p0, %p872_p13  ;;  %p878_p9 = scmp.lt.u32.totalorder %s876_s9, %s871_s6 }
  0x35   : > { %p880_p1 = scmp.lt.u32.totalorder %s871_s6, %s1101_s4 }
  0x36   : > { %p875_p5 = pneg %p874_p3  ;;  %p879_p2 = por %p878_p9, %p877_p7 }
  0x38   : > { %p881_p4 = por %p880_p1, %p879_p2 }
  0x3a   : > { %p882_p6 = pnand %p881_p4, %p875_p5 }
  0x3c   : > { %885 = shalt.err (!%p882_p6)
}
  0x3d   : > { %s886_s27 = scalar_lea.vmem %s1107_s25, 128  ;;  %s976_s28 = smov [#allocation2]  }
  0x3e   : > { %p887_p8 = scmp.ne.s32.totalorder %s1107_s25, %s886_s27  ;;  %s891_s29 = sshll.u32 %s976_s28, 4  ;;  %s892_s29 = int_to_ptr.vmem [resolvable:$false] %s891_s29 }
  0x3f   : > { %s893_s23 = scalar_lea.vmem %s892_s29, 256  ;;  %p894_p3 = scmp.lt.s32.totalorder %s1107_s25, %s892_s29 }
  0x40   : > { %p889_p10 = pnand %p887_p8, %p873_p0  ;;  %p895_p7 = scmp.lt.s32.totalorder %s893_s23, %s886_s27 }
  0x42   : > { %p890_p13 = pneg %p889_p10  ;;  %p896_p9 = por %p895_p7, %p894_p3 }
  0x44   : > { %p897_p2 = pnand %p896_p9, %p890_p13 }
  0x46   : > { %900 = shalt.err (!%p897_p2)
}
  0x47   : > { %760 = dma.hbm_to_vmem [thread:$0]  (!%p1103_p11), %s1101_s4, 128, %s1107_s25, %s149_s5  }
  0x48   : > { %p1227_p5 = scmp.ne.s32.totalorder %s1222_s20, 0 }
  0x49   : > { %s1137_s30 = sand.u32 (!%p1227_p5), 1, %s963_s13   ;;  %p1228_p0 = scmp.ne.s32.totalorder (!%p1227_p5), %s1220_s18, 0 }
  0x4a   : > { %168 = sbr.rel (%p1227_p5) target bundleno = 1097 (0x449), region = 32  ;;  %s668_s22 = sshll.u32 (!%p1227_p5), %s1137_s30, 3 }
  0x4b   : > { %s171_s6 = scalar_lea.sflag (!%p1227_p5), [#allocation3], %s1137_s30  ;;  %s1143_s7 = scalar_lea.vmem (!%p1227_p5), [#allocation2], %s668_s22 }
  0x51   : > { %946 = dma.done.wait (%p1228_p0), %s171_s6, 128  }
  0x52   : > { %948 = vsyncadd (%p1228_p0), %s171_s6, 4294967168  ;;  %p1229_p11 = scmp.eq.s32.totalorder %s1022_s16, 0 }
  0x54   : > { %950 = dma.done.wait (%p1229_p11), [#allocation6], 3072   ;;  %p1230_p1 = pmov %p1229_p11 }
  0x55   : > { %v977_v0 = vmov 0   ;;  %v807_v1 = vld [vmem:[#allocation5 + $0x4] ss:$12 sps:$4 sm:$0xff]   ;;  %v809_v2 = vld [vmem:[#allocation5] ss:$12 sps:$4 sm:$0xff]   ;;  %v978_v19 = vmov 0.0   ;;  %v238_v20 = vlaneseq }
  0x56   : > { %952 = vsyncadd (%p1230_p1), [#allocation6], 4294964224  ;;  %413 = vmatprep.mubr.bf16.mxu0 %v977_v0  ;;  %381 = vmatprep.subr.bf16.mxu0 %v807_v1  ;;  %v810_v3 = vld [vmem:[#allocation5 + $0x1c] ss:$12 sps:$4 sm:$0xff]   ;;  %v812_v4 = vld [vmem:[#allocation5 + $0x18] ss:$12 sps:$4 sm:$0xff]  }
  0x57   : > { %382 = vmatpush1.bf16.msra.mxu0 %v809_v2  ;;  %v813_v5 = vld [vmem:[#allocation5 + $0x34] ss:$12 sps:$4 sm:$0xff]   ;;  %v815_v6 = vld [vmem:[#allocation5 + $0x30] ss:$12 sps:$4 sm:$0xff]   ;;  %v816_v7 = vld [vmem:[#allocation5 + $0x4c] ss:$12 sps:$4 sm:$0xff]   ;;  %713 = vmatprep.subr.bf16.mxu1 %v978_v19 }
  0x58   : > { %383 = vmatprep.subr.bf16.mxu0 %v810_v3  ;;  %v818_v8 = vld [vmem:[#allocation5 + $0x48] ss:$12 sps:$4 sm:$0xff]   ;;  %v819_v9 = vld [vmem:[#allocation5 + $0x64] ss:$12 sps:$4 sm:$0xff]   ;;  %v821_v10 = vld [vmem:[#allocation5 + $0x60] ss:$12 sps:$4 sm:$0xff]  }
  0x59   : > { %v822_v11 = vld [vmem:[#allocation5 + $0x7c] ss:$12 sps:$4 sm:$0xff]   ;;  %v824_v12 = vld [vmem:[#allocation5 + $0x78] ss:$12 sps:$4 sm:$0xff]   ;;  %v825_v13 = vld [vmem:[#allocation5 + $0x94] ss:$12 sps:$4 sm:$0xff]  }
  0x5a   : > { %v827_v14 = vld [vmem:[#allocation5 + $0x90] ss:$12 sps:$4 sm:$0xff]   ;;  %v828_v15 = vld [vmem:[#allocation5 + $0xac] ss:$12 sps:$4 sm:$0xff]   ;;  %v830_v16 = vld [vmem:[#allocation5 + $0xa8] ss:$12 sps:$4 sm:$0xff]  }
  0x5b   : > { %384 = vmatpush1.bf16.msra.mxu0 %v812_v4  ;;  %v202_v17 = vld [vmem:[%s1143_s7] sm:$0xff]  ;;  %vm979_vm0 = vmmov 0   ;;  %v239_v21 = vshrl.u32 %v238_v20, 7  ;;  %v832_v36 = vld [vmem:[#allocation5 + $0x20] ss:$12 sps:$4 sm:$0xff]   ;;  %vm505_vm1 = vcmask 64512  }
  0x5c   : > { %385 = vmatprep.subr.bf16.mxu0 %v813_v5  ;;  %v203_v18 = vpack.c.bf16 %v202_v17, %v202_v17  ;;  %729 = vmatprep.mubr.msk.bf16.mxu1 %vm979_vm0, %v978_v19  ;;  %v236_v23 = vld [vmem:[%s1215_s2] sm:$0x7]  ;;  %v831_v35 = vld [vmem:[#allocation5 + $0x8] ss:$12 sps:$4 sm:$0xff]   ;;  %v833_v37 = vld [vmem:[#allocation5 + $0x38] ss:$12 sps:$4 sm:$0xff]  }
  0x5d   : > { %v244_v22 = vsub.s32 1, %v239_v21  ;;  %v240_v25 = vsub.s32 0, %v239_v21  ;;  %714 = vmatpush3.bf16.msra.mxu1 %v831_v35  ;;  %v834_v38 = vld [vmem:[#allocation5 + $0x50] ss:$12 sps:$4 sm:$0xff]   ;;  %v835_v39 = vld [vmem:[#allocation5 + $0x68] ss:$12 sps:$4 sm:$0xff]  }
  0x5e   : > { %715 = vmatprep.subr.bf16.mxu1 %v978_v19  ;;  %v836_v40 = vld [vmem:[#allocation5 + $0x80] ss:$12 sps:$4 sm:$0xff]   ;;  %v837_v41 = vld [vmem:[#allocation5 + $0x98] ss:$12 sps:$4 sm:$0xff]   ;;  %v838_v42 = vld [vmem:[#allocation5 + $0xb0] ss:$12 sps:$4 sm:$0xff]  }
  0x5f   : > { %386 = vmatpush1.bf16.msra.mxu0 %v815_v6  ;;  %v245_v24 = vrot.slane %v236_v23, %v244_v22  ;;  %v241_v30 = vrot.slane %v236_v23, %v240_v25  ;;  %v248_v48 = vsub.s32 2, %v239_v21  ;;  %vm521_vm2 = vcmask 1043456   ;;  %s697_s4 = sshll.u32 %s1022_s16, 7  ;;  %s200_s25 = scalar_lea.vmem [#allocation7], %s668_s22 }
  0x60   : > { %387 = vmatprep.subr.bf16.mxu0 %v816_v7  ;;  %s581_s26 = sshll.u32 %s200_s25, 4  ;;  %vm565_vm3 = vcmask 130048   ;;  %s1169_s9 = scalar_lea.hbm %s1216_s3, %s697_s4  ;;  %s1171_s26 = int_to_ptr.vmem [resolvable:$true] %s581_s26 }
  0x61   : > { %716 = vmatpush3.bf16.msra.mxu1 %v832_v36  ;;  %v249_v49 = vrot.slane %v236_v23, %v248_v48  ;;  %s568_s10 = scalar_lea.sflag [#allocation4], %s1137_s30  ;;  %s901_s16 = scalar_lea.vmem %s1171_s26, 128 }
  0x62   : > { %717 = vmatprep.subr.bf16.mxu1 %v978_v19  ;;  %p902_p4 = scmp.ne.s32.totalorder %s1171_s26, %s901_s16  ;;  %s980_s11 = smov [#allocation7]  }
  0x63   : > { %388 = vmatpush1.bf16.msra.mxu0 %v818_v8  ;;  %s905_s27 = sshll.u32 %s980_s11, 4  ;;  %s906_s27 = int_to_ptr.vmem [resolvable:$false] %s905_s27 }
  0x64   : > { %389 = vmatprep.subr.bf16.mxu0 %v819_v9  ;;  %p903_p6 = pnand %p902_p4, %p1092_p12  ;;  %s907_s28 = scalar_lea.vmem %s906_s27, 256 }
  0x65   : > { %718 = vmatpush3.bf16.msra.mxu1 %v833_v37  ;;  %p908_p10 = scmp.lt.s32.totalorder %s1171_s26, %s906_s27  ;;  %p909_p13 = scmp.lt.s32.totalorder %s907_s28, %s901_s16 }
  0x66   : > { %719 = vmatprep.subr.bf16.mxu1 %v978_v19  ;;  %p904_p8 = pneg %p903_p6 }
  0x67   : > { %390 = vmatpush1.bf16.msra.mxu0 %v821_v10  ;;  %p910_p3 = por %p909_p13, %p908_p10 }
  0x68   : > { %391 = vmatprep.subr.bf16.mxu0 %v822_v11 }
  0x69   : > { %720 = vmatpush3.bf16.msra.mxu1 %v834_v38  ;;  %p911_p7 = pnand %p910_p3, %p904_p8 }
  0x6a   : > { %721 = vmatprep.subr.bf16.mxu1 %v978_v19 }
  0x6b   : > { %392 = vmatpush1.bf16.msra.mxu0 %v824_v12 }
  0x6c   : > { %393 = vmatprep.subr.bf16.mxu0 %v825_v13 }
  0x6d   : > { %722 = vmatpush3.bf16.msra.mxu1 %v835_v39 }
  0x6e   : > { %723 = vmatprep.subr.bf16.mxu1 %v978_v19 }
  0x6f   : > { %394 = vmatpush1.bf16.msra.mxu0 %v827_v14 }
  0x70   : > { %395 = vmatprep.subr.bf16.mxu0 %v828_v15 }
  0x71   : > { %724 = vmatpush3.bf16.msra.mxu1 %v836_v40 }
  0x72   : > { %725 = vmatprep.subr.bf16.mxu1 %v978_v19 }
  0x73   : > { %396 = vmatpush1.bf16.msra.mxu0 %v830_v16 }
  0x74   : > { %733 = vmatprep.subr.bf16.mxu0 %v978_v19 }
  0x75   : > { %726 = vmatpush3.bf16.msra.mxu1 %v837_v41 }
  0x76   : > { %414 = vmatmul.mubr.bf16.vlgmr.msra.gmra.mrb[0].mxu0 %v203_v18  ;;  %727 = vmatprep.subr.bf16.mxu1 %v978_v19 }
  0x77   : > { %735 = vmatprep.mubr.msk.bf16.mxu0 %vm979_vm0, %v978_v19 }
  0x79   : > { %728 = vmatpush3.bf16.msra.mxu1 %v838_v42 }
  0x7a   : > { %739 = vmatprep.subr.bf16.mxu1 %v978_v19 }
  0x7c   : > { %730 = vmatmul.mubr.bf16.vlgmr.msra.gmra.mrb[0].mxu1 %v203_v18 }
  0x7d   : > { %741 = vmatprep.mubr.msk.bf16.mxu1 %vm979_vm0, %v978_v19 }
 0x149   : > { %v415_v26 = vpop.f32.mrb[0].mxu0 }
 0x14a   : > { %v417_v27 = vpop.f32.mrb[1].mxu0  ;;  %v416_v33 = vadd.f32 %v415_v26, %v241_v30 }
 0x14b   : > { %v418_v28 = vadd.f32 %v417_v27, %v245_v24  ;;  %v419_v29 = vpop.f32.mrb[2].mxu0 }
 0x14c   : > { %v420_v31 = vpop.f32.mrb[3].mxu0  ;;  %v462_v34 = vpack.c.bf16 %v416_v33, %v416_v33 }
 0x14d   : > { %v463_v32 = vpack.c.bf16 %v418_v28, %v418_v28 }
 0x14f   : > { %734 = vmatpush3.bf16.xpose.msra.mxu0 %v463_v32  ;;  %v456_v50 = vpop.f32.mrb[0].mxu1 }
 0x150   : > { %v457_v51 = vadd.f32 %v456_v50, %v249_v49  ;;  %v731_v52 = vpop.f32.mrb[1].mxu1 }
 0x151   : > { %v459_v53 = vpop.f32.mrb[2].mxu1 }
 0x152   : > { %v464_v54 = vpack.c.bf16 %v457_v51, %v457_v51  ;;  %v732_v55 = vpop.f32.mrb[3].mxu1 }
 0x154   : > { %v523_v56 = vsel %vm521_vm2, %v464_v54, 0 }
 0x155   : > { %740 = vmatpush3.bf16.msra.mxu1 %v523_v56 }
 0x156   : > { %736 = vmatmul.mubr.bf16.vlgmr.msra.gmra.mrb[4].mxu0 %v462_v34 }
 0x229   : > { %v499_v43 = vpop.f32.mrb[4].mxu0 }
 0x22a   : > { %v737_v44 = vpop.f32.mrb[5].mxu0  ;;  %v506_v45 = vsel %vm505_vm1, %v499_v43, -inf }
 0x22b   : > { %507 = vmax.xlane.f32.xlu0 %v506_v45  ;;  %v502_v46 = vpop.f32.mrb[6].mxu0 }
 0x22c   : > { %v738_v47 = vpop.f32.mrb[7].mxu0 }
 0x2b8   : > { %v508_v57 = vpop.xlane.xlu0 %507 }
 0x2b9   : > { %v509_v58 = vsub.f32 %v499_v43, %v508_v57 }
 0x2bb   : > { %v510_v59 = vmul.f32 1.442695, %v509_v58 }
 0x2bd   : > { %839 = vpow2.f32 %v510_v59 }
 0x2c7   : > { %v840_v60 = vpop.eup %839 }
 0x2c8   : > { %v512_v61 = vsel %vm505_vm1, %v840_v60, 0.0 }
 0x2c9   : > { %513 = vadd.xlane.f32.xlu0 %v512_v61 }
 0x356   : > { %v514_v62 = vpop.xlane.xlu0 %513 }
 0x357   : > { %841 = vrcp.f32 %v514_v62 }
 0x361   : > { %v842_v63 = vpop.eup %841 }
 0x362   : > { %v516_v0 = vmul.f32 %v842_v63, %v840_v60 }
 0x364   : > { %v517_v1 = vpack.c.bf16 %v516_v0, %v516_v0 }
 0x366   : > { %742 = vmatmul.mubr.msk.bf16.vlgmr.msra.gmra.mrb[4].mxu1 %vm505_vm1, %v517_v1 }
 0x439   : > { %v559_v2 = vpop.f32.mrb[4].mxu1 }
 0x43a   : > { %566 = vst.msk [vmem:[%s200_s25] sm:$0xff] %vm565_vm3, %v559_v2  ;;  %v743_v3 = vpop.f32.mrb[5].mxu1 }
 0x43b   : > { %v562_v4 = vpop.f32.mrb[6].mxu1 }
 0x43c   : > { %914 = shalt.err (!%p911_p7)
}
 0x43d   : > { %s915_s29 = scalar_lea.hbm %s1169_s9, 128  ;;  %s919_s22 = scalar_lea.hbm %s1216_s3, 256 }
 0x43e   : > { %p916_p9 = scmp.ne.s32.totalorder %s1169_s9, %s915_s29  ;;  %p920_p0 = scmp.lt.u32.totalorder %s1169_s9, %s1216_s3 }
 0x43f   : > { %p921_p11 = scmp.lt.u32.totalorder %s919_s22, %s915_s29  ;;  %p923_p4 = scmp.lt.u32.totalorder %s915_s29, %s1169_s9 }
 0x440   : > { %p917_p2 = pnand %p916_p9, %p1092_p12 }
 0x441   : > { %p922_p1 = por %p921_p11, %p920_p0 }
 0x442   : > { %p918_p5 = pneg %p917_p2 }
 0x443   : > { %p924_p6 = por %p923_p4, %p922_p1 }
 0x445   : > { %p925_p8 = pnand %p924_p6, %p918_p5 }
 0x447   : > { %928 = shalt.err (!%p925_p8)
}
 0x448   : > { %751 = dma.vmem_to_hbm [thread:$0]  (%p1092_p12), %s1171_s26, 128, %s1169_s9, %s568_s10   ;;  %v744_v5 = vpop.f32.mrb[7].mxu1 }
 0x449 PF: > { %s593_s18 = sand.u32 1, %s959_s12   ;;  %p1231_p10 = scmp.ne.s32.totalorder %s1221_s19, 0 }
 0x44a   : > { %p1232_p13 = scmp.ge.s32.totalorder %s971_s15, 2  ;;  %s594_s20 = scalar_lea.sflag [#allocation4], %s593_s18 }
 0x44c   : > { %p762_p3 = pnand %p1232_p13, %p1231_p10 }
 0x44e   : > { %954 = dma.done.wait (!%p762_p3), %s594_s20, 128  }
 0x44f   : > { %956 = vsyncadd (!%p762_p3), %s594_s20, 4294967168  ;;  %p17_p7 = scmp.ge.s32.totalorder %s1057_s24, 4   ;;  %s1233_s12 = smov %s963_s13 }
 0x450   : > { %s1234_s13 = smov %s967_s14  ;;  %s1235_s14 = smov %s1088_s17 }
 0x451   : > { %s1236_s15 = smov %s1057_s24  ;;  %19 = sbr.rel (!%p17_p7) target bundleno = 6 (0x6), region = 81 }
 0x458   :  { %599 = vsyncpa [#allocation3], 1 }
 0x459   :  { %601 = vsyncpa [#allocation3 + $0x1], 1 }
 0x45a   :  { %602 = vsyncpa [#allocation6], 1 }
 0x45b   :  { %603 = vsyncpa [#allocation4], 1 }
 0x45c   :  { %605 = vsyncpa [#allocation4 + $0x1], 1 }

</bundles_post_ra>
